<compile_context>
chip_gen: v7x
topology: tpu7x:2x2x1
jax: 0.10.0
libtpu: 0.0.40
codegen_flags: <defaults>
</compile_context>

<pallas_src>
import functools

import jax
import jax.numpy as jnp
from jax.experimental import pallas as pl
from jax.experimental.pallas import tpu as pltpu

NUM_CLASSES = 25
_DEFAULT_BLOCK_ROWS = 8192           # packed rows per grid step
_VMEM_BUDGET_PER_BUFFER = 12 << 20   # per single buffer set; x2 when double-buffered


def _round_up(x, m):
    return (x + m - 1) // m * m


def _sublane_multiple(dtype):
    itemsize = jnp.dtype(dtype).itemsize
    return max(8, 32 // itemsize)


def _hinge_loss_kernel(x_ref, tgt_ref, out_ref, *, total_rows, block_rows, pack, need_mask):
    # x_ref   : (tb, pack*25) native float dtype in VMEM
    # tgt_ref : (tb, pack)    int32 (pre-offset by 25*k)   in VMEM
    # out_ref : (1, 1, pack*25) f32 per-tile partial column sums (lane-dense)
    x = x_ref[...].astype(jnp.float32)        # cast in-register (no wrapper HBM upcast pass)
    tb, cols = x.shape
    col_ids = jax.lax.broadcasted_iota(jnp.int32, (tb, cols), 1)
    t = tgt_ref[...]
    # Pre-offset targets live in disjoint ranges [25k, 25k+24], so a simple OR of
    # broadcast compares marks exactly the target class of each packed original row.
    is_tgt = col_ids == t[:, 0:1]
    for k in range(1, pack):                  # static unroll, pack <= 5
        is_tgt = jnp.logical_or(is_tgt, col_ids == t[:, k:k + 1])
    # Fused +-1 sign: relu(0.5 - x) at the target class, relu(0.5 + x) elsewhere.
    hinge = jnp.maximum(jnp.where(is_tgt, 0.5 - x, 0.5 + x), 0.0)
    if need_mask:                             # only emitted for a ragged last tile
        row_ids = pl.program_id(0) * block_rows + jax.lax.broadcasted_iota(
            jnp.int32, (tb, 1), 0)
        hinge = jnp.where(row_ids < total_rows, hinge, 0.0)   # select-based (NaN-safe)
    # Defer the cross-lane reduce: per-tile partial column sums only.
    out_ref[0] = jnp.sum(hinge, axis=0, keepdims=True)


def hinge_loss(output, target, *, block_rows=_DEFAULT_BLOCK_ROWS):
    """output: (B, 25) float (any float dtype), target: (B,) int class ids -> scalar f32."""
    b, c = output.shape
    assert c == NUM_CLASSES
    # Lane packing: fold `pack` consecutive batch rows into the lane axis. The reshape is
    # free (row-major contiguous); largest divisor of B avoids any padding/slice copy.
    pack = next(p for p in (5, 4, 3, 2, 1) if b % p == 0)
    r = b // pack
    cols = pack * c
    packed_x = output.reshape(r, cols)
    tgt_packed = (target.astype(jnp.int32).reshape(r, pack)
                  + c * jnp.arange(pack, dtype=jnp.int32)[None, :])

    # Tile the packed-row axis: dtype-aware sublane rounding + VMEM-aware cap.
    sub = _sublane_multiple(output.dtype)
    lane_pad = _round_up(cols, 128)
    per_row_vmem = lane_pad * jnp.dtype(output.dtype).itemsize + 128 * 4  # data + target
    tb_cap = max(sub, (_VMEM_BUDGET_PER_BUFFER // per_row_vmem) // sub * sub)
    tb = min(_round_up(block_rows, sub), tb_cap)
    if r <= tb:
        tb = r                                # single full-extent block (always legal)
    num_tiles = pl.cdiv(r, tb)
    need_mask = (r % tb) != 0

    partials = pl.pallas_call(
        functools.partial(_hinge_loss_kernel, total_rows=r, block_rows=tb,
                          pack=pack, need_mask=need_mask),
        out_shape=jax.ShapeDtypeStruct((num_tiles, 1, cols), jnp.float32),
        grid=(num_tiles,),
        in_specs=[
            pl.BlockSpec((tb, cols), lambda i: (i, 0)),
            pl.BlockSpec((tb, pack), lambda i: (i, 0)),
        ],
        # Per-tile partial sums into distinct lane-dense blocks -> no resident accumulator,
        # no loop-carried dependency; "parallel" lets v7x split the batch across both TCs.
        out_specs=pl.BlockSpec((1, 1, cols), lambda i: (i, 0, 0)),
        compiler_params=pltpu.CompilerParams(
            dimension_semantics=("parallel",),
            vmem_limit_bytes=32 * 1024 * 1024,
        ),
    )(packed_x, tgt_packed)
    # Final reduce of the tiny partials + single exact normalization by the true batch size.
    return jnp.sum(partials) / b


def hinge_loss_ref(output, target):
    """Pure-JAX reference mirroring the PyTorch forward."""
    b, c = output.shape
    onehot = jnp.where(
        jax.lax.broadcasted_iota(jnp.int32, (b, c), 1) == target[:, None].astype(jnp.int32),
        1.0, -1.0)
    return jnp.mean(
        jnp.sum(jnp.maximum(0.5 - onehot * output.astype(jnp.float32), 0.0), axis=-1))


if __name__ == "__main__":
    key = jax.random.PRNGKey(0)
    ks = jax.random.split(key, 8)

    # 1) pack=5 path, single full-extent tile, f32.
    B = 40
    x1 = jax.random.normal(ks[0], (B, NUM_CLASSES), dtype=jnp.float32)
    t1 = jax.random.randint(ks[1], (B,), 0, NUM_CLASSES, dtype=jnp.int32)
    l1 = jax.block_until_ready(hinge_loss(x1, t1))
    r1 = jax.block_until_ready(hinge_loss_ref(x1, t1))
    assert jnp.allclose(l1, r1, rtol=1e-5, atol=1e-5), (l1, r1)

    # 2) pack=4 fallback (B % 5 != 0), multi-tile grid with a ragged last tile, f32.
    B = 36
    x2 = jax.random.normal(ks[2], (B, NUM_CLASSES), dtype=jnp.float32)
    t2 = jax.random.randint(ks[3], (B,), 0, NUM_CLASSES, dtype=jnp.int32)
    l2 = jax.block_until_ready(hinge_loss(x2, t2, block_rows=8))
    r2 = jax.block_until_ready(hinge_loss_ref(x2, t2))
    assert jnp.allclose(l2, r2, rtol=1e-5, atol=1e-5), (l2, r2)

    # 3) bf16 input, multi-tile + ragged last tile, dtype-aware (16-row) sublane rounding.
    B = 200
    x3 = jax.random.normal(ks[4], (B, NUM_CLASSES), dtype=jnp.float32).astype(jnp.bfloat16)
    t3 = jax.random.randint(ks[5], (B,), 0, NUM_CLASSES, dtype=jnp.int32)
    l3 = jax.block_until_ready(hinge_loss(x3, t3, block_rows=16))
    r3 = jax.block_until_ready(hinge_loss_ref(x3.astype(jnp.float32), t3))
    assert jnp.allclose(l3, r3, rtol=1e-4, atol=1e-4), (l3, r3)

    # 4) pack=1 fallback (B prime), single full-extent tile.
    B = 7
    x4 = jax.random.normal(ks[6], (B, NUM_CLASSES), dtype=jnp.float32)
    t4 = jax.random.randint(ks[7], (B,), 0, NUM_CLASSES, dtype=jnp.int32)
    l4 = jax.block_until_ready(hinge_loss(x4, t4))
    r4 = jax.block_until_ready(hinge_loss_ref(x4, t4))
    assert jnp.allclose(l4, r4, rtol=1e-5, atol=1e-5), (l4, r4)

    print("KERNEL_OK")
</pallas_src>

<mosaic_0001>
module attributes {stable_mosaic.version = 11 : i64} {
  func.func @_hinge_loss_kernel(%arg0: i32, %arg1: memref<8x125xf32, #tpu.memory_space<vmem>>, %arg2: memref<8x5xi32, #tpu.memory_space<vmem>>, %arg3: memref<1x1x125xf32, #tpu.memory_space<vmem>>) attributes {dimension_semantics = [#tpu.dimension_semantics<parallel>], iteration_bounds = array<i64: 1>, scalar_prefetch = 0 : i64, scratch_operands = 0 : i64, tpu.core_type = #tpu.core_type<tc>, window_params = [{transform_indices = @transform_0, window_bounds = array<i64: 8, 125>}, {transform_indices = @transform_1, window_bounds = array<i64: 8, 5>}, {transform_indices = @transform_2, window_bounds = array<i64: 1, 1, 125>}]} {
    %c0 = arith.constant 0 : index
    %c0_0 = arith.constant 0 : index
    %0 = vector.load %arg1[%c0, %c0_0] : memref<8x125xf32, #tpu.memory_space<vmem>>, vector<8x125xf32>
    %1 = tpu.iota {dimensions = array<i32: 1>} : vector<8x125xi32>
    %c0_1 = arith.constant 0 : index
    %c0_2 = arith.constant 0 : index
    %2 = vector.load %arg2[%c0_1, %c0_2] : memref<8x5xi32, #tpu.memory_space<vmem>>, vector<8x5xi32>
    %3 = vector.extract_strided_slice %2 {offsets = [0, 0], sizes = [8, 1], strides = [1, 1]} : vector<8x5xi32> to vector<8x1xi32>
    %4 = vector.broadcast %3 : vector<8x1xi32> to vector<8x125xi32>
    %5 = arith.cmpi eq, %1, %4 : vector<8x125xi32>
    %6 = vector.extract_strided_slice %2 {offsets = [0, 1], sizes = [8, 1], strides = [1, 1]} : vector<8x5xi32> to vector<8x1xi32>
    %7 = vector.broadcast %6 : vector<8x1xi32> to vector<8x125xi32>
    %8 = arith.cmpi eq, %1, %7 : vector<8x125xi32>
    %9 = arith.ori %5, %8 : vector<8x125xi1>
    %10 = vector.extract_strided_slice %2 {offsets = [0, 2], sizes = [8, 1], strides = [1, 1]} : vector<8x5xi32> to vector<8x1xi32>
    %11 = vector.broadcast %10 : vector<8x1xi32> to vector<8x125xi32>
    %12 = arith.cmpi eq, %1, %11 : vector<8x125xi32>
    %13 = arith.ori %9, %12 : vector<8x125xi1>
    %14 = vector.extract_strided_slice %2 {offsets = [0, 3], sizes = [8, 1], strides = [1, 1]} : vector<8x5xi32> to vector<8x1xi32>
    %15 = vector.broadcast %14 : vector<8x1xi32> to vector<8x125xi32>
    %16 = arith.cmpi eq, %1, %15 : vector<8x125xi32>
    %17 = arith.ori %13, %16 : vector<8x125xi1>
    %18 = vector.extract_strided_slice %2 {offsets = [0, 4], sizes = [8, 1], strides = [1, 1]} : vector<8x5xi32> to vector<8x1xi32>
    %19 = vector.broadcast %18 : vector<8x1xi32> to vector<8x125xi32>
    %20 = arith.cmpi eq, %1, %19 : vector<8x125xi32>
    %21 = arith.ori %17, %20 : vector<8x125xi1>
    %cst = arith.constant 5.000000e-01 : f32
    %22 = vector.broadcast %cst : f32 to vector<8x125xf32>
    %23 = arith.subf %22, %0 : vector<8x125xf32>
    %cst_3 = arith.constant 5.000000e-01 : f32
    %24 = vector.broadcast %cst_3 : f32 to vector<8x125xf32>
    %25 = arith.addf %24, %0 : vector<8x125xf32>
    %26 = arith.select %21, %23, %25 : vector<8x125xi1>, vector<8x125xf32>
    %cst_4 = arith.constant 0.000000e+00 : f32
    %27 = vector.broadcast %cst_4 : f32 to vector<8x125xf32>
    %28 = arith.maximumf %26, %27 : vector<8x125xf32>
    %cst_5 = arith.constant dense<0.000000e+00> : vector<125xf32>
    %29 = vector.multi_reduction <add>, %28, %cst_5 [0] : vector<8x125xf32> to vector<125xf32>
    %30 = vector.shape_cast %29 : vector<125xf32> to vector<1x125xf32>
    %c0_6 = arith.constant 0 : index
    %c0_7 = arith.constant 0 : index
    %c0_8 = arith.constant 0 : index
    %31 = vector.load %arg3[%c0_6, %c0_7, %c0_8] : memref<1x1x125xf32, #tpu.memory_space<vmem>>, vector<1x1x125xf32>
    %32 = vector.shape_cast %31 : vector<1x1x125xf32> to vector<1x125xf32>
    %33 = vector.shape_cast %30 : vector<1x125xf32> to vector<1x1x125xf32>
    tpu.vector_store %arg3[%c0_6, %c0_7, %c0_8], %33 {strides = array<i32>} : memref<1x1x125xf32, #tpu.memory_space<vmem>>, vector<1x1x125xf32>,
    return
  }
  func.func @transform_0(%arg0: i32) -> (i32, i32) {
    %c0_i32 = arith.constant 0 : i32
    %c0_i32_0 = arith.constant 0 : i32
    return %arg0, %c0_i32 : i32, i32
  }
  func.func @transform_1(%arg0: i32) -> (i32, i32) {
    %c0_i32 = arith.constant 0 : i32
    %c0_i32_0 = arith.constant 0 : i32
    return %arg0, %c0_i32 : i32, i32
  }
  func.func @transform_2(%arg0: i32) -> (i32, i32, i32) {
    %c0_i32 = arith.constant 0 : i32
    %c0_i32_0 = arith.constant 0 : i32
    %c0_i32_1 = arith.constant 0 : i32
    return %arg0, %c0_i32, %c0_i32_0 : i32, i32, i32
  }
}

</mosaic_0001>

<bundles_post_ra>
// kernel: tpu_custom_call.1
= control target key start
LH: loop header
LB: loop body
LE: loop exit
PB: predicated region body
PF: predicated region fallthrough
CT: control target
= control target key end

     0   :  { %7 = vsyncpa [#allocation3], 0  ;;  %s239_s0 = inlined_call_operand.hbm [shape: f32[8,125], index: 0, kind: input, shape index: {}]   ;;  %s240_s1 = inlined_call_operand.hbm [shape: s32[8,5], index: 1, kind: input, shape index: {}]   ;;  %s241_s2 = inlined_call_operand.hbm [shape: f32[1,1,125], index: 2, kind: output, shape index: {}]  }
   0x1   :  { %8 = vsyncpa [#allocation6], 0 }
   0x2   :  { %9 = vsyncpa [#allocation4], 0  ;;  %s180_s9 = smov [#allocation2]   ;;  %s181_s11 = smov [#allocation5]  }
   0x3   :  { %s16_s10 = sshll.u32 %s180_s9, 4  ;;  %s26_s12 = sshll.u32 %s181_s11, 4  ;;  %s17_s10 = int_to_ptr.vmem [resolvable:$true] %s16_s10  ;;  %s27_s12 = int_to_ptr.vmem [resolvable:$true] %s26_s12 }
   0x4   :  { %s108_s15 = scalar_lea.hbm %s239_s0, 128 }
   0x5   :  { %p109_p0 = scmp.ne.s32.totalorder %s239_s0, %s108_s15  ;;  %p112_p1 = scmp.lt.u32.totalorder %s108_s15, %s239_s0 }
   0x7   :  { %p114_p2 = pnand %p112_p1, %p109_p0 }
   0x9   :  { %117 = shalt.err (!%p114_p2)
}
   0xa   :  { %s118_s20 = scalar_lea.vmem %s17_s10, 128  ;;  %p123_p4 = scmp.lt.s32.totalorder %s17_s10, %s17_s10 }
   0xb   :  { %p119_p3 = scmp.ne.s32.totalorder %s17_s10, %s118_s20  ;;  %p124_p5 = scmp.lt.s32.totalorder %s118_s20, %s118_s20 }
   0xd   :  { %p125_p6 = por %p124_p5, %p123_p4 }
   0xf   :  { %p126_p7 = pnand %p125_p6, %p119_p3 }
  0x11   :  { %129 = shalt.err (!%p126_p7)
}
  0x12   :  { %19 = dma.hbm_to_vmem [thread:$0]  %s239_s0, 128, %s17_s10, [#allocation3]  }
  0x13   :  { %s130_s25 = scalar_lea.hbm %s240_s1, 128 }
  0x14   :  { %p131_p8 = scmp.ne.s32.totalorder %s240_s1, %s130_s25  ;;  %p134_p9 = scmp.lt.u32.totalorder %s130_s25, %s240_s1 }
  0x16   :  { %p136_p10 = pnand %p134_p9, %p131_p8 }
  0x18   :  { %139 = shalt.err (!%p136_p10)
}
  0x19   :  { %s140_s30 = scalar_lea.vmem %s27_s12, 128  ;;  %p145_p12 = scmp.lt.s32.totalorder %s27_s12, %s27_s12 }
  0x1a   :  { %p141_p11 = scmp.ne.s32.totalorder %s27_s12, %s140_s30  ;;  %p146_p13 = scmp.lt.s32.totalorder %s140_s30, %s140_s30 }
  0x1c   :  { %p147_p0 = por %p146_p13, %p145_p12 }
  0x1e   :  { %p148_p1 = pnand %p147_p0, %p141_p11 }
  0x20   :  { %151 = shalt.err (!%p148_p1)
}
  0x21   :  { %29 = dma.hbm_to_vmem [thread:$0]  %s240_s1, 128, %s27_s12, [#allocation6]  }
  0x22   :  { %174 = dma.done.wait [#allocation3], 128  }
  0x23   :  { %175 = vsyncadd [#allocation3], 4294967168 }
  0x24   :  { %176 = dma.done.wait [#allocation6], 128  }
  0x25   :  { %177 = vsyncadd [#allocation6], 4294967168  ;;  %v182_v0 = vmov 2   ;;  %v183_v1 = vmov 0   ;;  %v39_v2 = vld [vmem:[#allocation5] sm:$0xff]  ;;  %v184_v3 = vmov 3   ;;  %v37_v6 = vlaneseq }
  0x26   :  { %104 = vset.pattern.permute.xlu1 %v182_v0  ;;  %102 = vset.pattern.permute.xlu0 %v183_v1  ;;  %v185_v4 = vmov 1   ;;  %v186_v5 = vmov 4   ;;  %v36_v12 = vld [vmem:[#allocation2] sm:$0xff]  ;;  %vm68_vm9 = vcmask 1022976   ;;  %s187_s1 = smov [#allocation7]   ;;  %vm76_vm10 = vcmask 1015808  }
  0x27   :  { %50 = vperm.xlu1 %104, %v39_v2   ;;  %41 = vperm.xlu0 %102, %v39_v2   ;;  %v38_v9 = vand.u32 127, %v37_v6  ;;  %v64_v13 = vsub.f32 0.5, %v36_v12  ;;  %v65_v14 = vadd.f32 0.5, %v36_v12  ;;  %s84_s4 = sshll.u32 %s187_s1, 4  ;;  %s85_s4 = int_to_ptr.vmem [resolvable:$true] %s84_s4 }
  0x28   :  { %s152_s5 = scalar_lea.vmem %s85_s4, 16  ;;  %s156_s6 = scalar_lea.vmem %s85_s4, 32 }
  0x29   :  { %p153_p2 = scmp.ne.s32.totalorder %s85_s4, %s152_s5  ;;  %p157_p3 = scmp.lt.s32.totalorder %s85_s4, %s85_s4 }
  0x2a   :  { %p158_p4 = scmp.lt.s32.totalorder %s156_s6, %s152_s5 }
  0x2b   :  { %105 = vset.pattern.permute.xlu1 %v184_v3  ;;  %103 = vset.pattern.permute.xlu0 %v185_v4 }
  0x2c   :  { %55 = vperm.xlu1 %105, %v39_v2   ;;  %45 = vperm.xlu0 %103, %v39_v2   ;;  %p159_p5 = por %p158_p4, %p157_p3 }
  0x2e   :  { %p160_p6 = pnand %p159_p5, %p153_p2 }
  0x30   :  { %106 = vset.pattern.permute.xlu1 %v186_v5  ;;  %107 = vset.pattern.permute.xlu0 %v186_v5 }
  0x31   :  { %60 = vperm.xlu1 %106, %v39_v2  }
  0xa6   :  { %v51_v7 = vpop.permute.xlu1 %50  ;;  %v42_v8 = vpop.permute.xlu0 %41 }
  0xa7   :  { %vm43_vm0 = vcmp.eq.s32.totalorder %v38_v9, %v42_v8  ;;  %vm52_vm2 = vcmp.eq.s32.totalorder %v38_v9, %v51_v7 }
  0xab   :  { %v56_v10 = vpop.permute.xlu1 %55  ;;  %v46_v11 = vpop.permute.xlu0 %45 }
  0xac   :  { %vm47_vm1 = vcmp.eq.s32.totalorder %v38_v9, %v46_v11  ;;  %vm57_vm5 = vcmp.eq.s32.totalorder %v38_v9, %v56_v10 }
  0xad   :  { %vm48_vm3 = vmor %vm43_vm0, %vm47_vm1 }
  0xae   :  { %vm53_vm4 = vmor %vm48_vm3, %vm52_vm2 }
  0xaf   :  { %vm58_vm6 = vmor %vm53_vm4, %vm57_vm5 }
  0xb0   :  { %v61_v15 = vpop.permute.xlu1 %60 }
  0xb1   :  { %vm62_vm7 = vcmp.eq.s32.totalorder %v38_v9, %v61_v15 }
  0xb2   :  { %vm63_vm8 = vmor %vm58_vm6, %vm62_vm7 }
  0xb3   :  { %v66_v16 = vsel %vm63_vm8, %v64_v13, %v65_v14 }
  0xb4   :  { %v67_v17 = vmax.f32 %v66_v16, 0.0 }
  0xb6   :  { %v69_v18 = vsel %vm68_vm9, %v67_v17, 0.0 }
  0xb7   :  { %v70_v19 = vrot.slane %v69_v18, 4 }
  0xb9   :  { %v71_v20 = vadd.f32 %v70_v19, %v69_v18 }
  0xbb   :  { %v72_v21 = vrot.slane %v71_v20, 2 }
  0xbd   :  { %v73_v22 = vadd.f32 %v72_v21, %v71_v20 }
  0xbf   :  { %v74_v23 = vrot.slane %v73_v22, 1 }
  0xc1   :  { %v75_v24 = vadd.f32 %v74_v23, %v73_v22 }
  0xc3   :  { %77 = vst.msk [vmem:[#allocation7] sm:$0x1] %vm76_vm10, %v75_v24 }
  0xc4   :  { %163 = shalt.err (!%p160_p6)
}
  0xc5   :  { %s164_s9 = scalar_lea.hbm %s241_s2, 16 }
  0xc6   :  { %p165_p7 = scmp.ne.s32.totalorder %s241_s2, %s164_s9  ;;  %p168_p8 = scmp.lt.u32.totalorder %s164_s9, %s241_s2 }
  0xc8   :  { %p170_p9 = pnand %p168_p8, %p165_p7 }
  0xca   :  { %173 = shalt.err (!%p170_p9)
}
  0xcb   :  { %87 = dma.vmem_to_hbm [thread:$0]  %s85_s4, 16, %s241_s2, [#allocation4]  }
  0xcc   :  { %178 = dma.done.wait [#allocation4], 16  }
  0xcd   :  { %179 = vsyncadd [#allocation4], 4294967280 }
  0xce   :  { %91 = vsyncpa [#allocation3], 1 }
  0xcf   :  { %92 = vsyncpa [#allocation6], 1 }
  0xd0   :  { %93 = vsyncpa [#allocation4], 1 }

</bundles_post_ra>
